<compile_context>
chip_gen: v7x
topology: tpu7x:2x2x1
jax: 0.10.0
libtpu: 0.0.40
codegen_flags: <defaults>
</compile_context>

<pallas_src>
import functools

import jax
import jax.numpy as jnp
from jax.experimental import pallas as pl
from jax.experimental.pallas import tpu as pltpu


def _round_up(x: int, m: int) -> int:
    return (x + m - 1) // m * m


def _vmem_capacity_bytes() -> int:
    """Generation-aware VMEM capacity (128 MiB v5e/v6e, 64 MiB v7x)."""
    try:
        info = pltpu.get_tpu_info()
        cap = getattr(info, "vmem_capacity_bytes", None)
        if cap:
            return int(cap)
    except Exception:
        pass
    return 64 * 1024 * 1024  # conservative default (v7x-sized)


def _make_fused_mlp_kernel(num_layers: int, tanh_flags):
    """Kernel: refs = (x_ref, w0_ref, b0_ref, ..., w{n-1}_ref, b{n-1}_ref, o_ref)."""

    def kernel(*refs):
        x_ref = refs[0]
        o_ref = refs[-1]
        h = x_ref[...]                                     # f32 [TM, IN_pad]
        for i in range(num_layers):
            w_ref = refs[1 + 2 * i]                        # bf16 [in_pad, out_pad]
            b_ref = refs[2 + 2 * i]                        # f32  [1,  out_pad]
            # bf16 x bf16 matmul on the MXU, f32 accumulation.
            acc = jnp.dot(h.astype(jnp.bfloat16), w_ref[...],
                          preferred_element_type=jnp.float32)
            acc = acc + b_ref[...]                         # f32 bias broadcast
            if tanh_flags[i]:
                acc = jnp.tanh(acc)                        # EUP transcendental, f32
            h = acc
        o_ref[...] = h.astype(o_ref.dtype)

    return kernel


def mlp_forward_fused(x, params, is_mmlp, *, tm_max=1024, weight_buffers=1):
    """Run the whole MLP as one fused Pallas kernel.

    x:       [B, IN]  float32
    params:  list of (W [in, out], b [out]) float32
    weight_buffers: 1 -> single-buffer grid-invariant weights (pl.Buffered(1));
                    2 -> default double-buffering (fallback).
    """
    B, IN = x.shape
    n = len(params)
    tanh_flags = [True if is_mmlp else (i < n - 1) for i in range(n)]

    # ---- padded feature dims --------------------------------------------
    # First-layer contraction dim only needs sublane (8) alignment; hidden /
    # output dims are padded to 128 lanes (dense stores, full MXU tiles).
    dims = [IN] + [w.shape[1] for w, _ in params]
    pdims = [_round_up(IN, 8)] + [_round_up(d, 128) for d in dims[1:]]
    OUT, OUT_pad = dims[-1], pdims[-1]

    # ---- generation-aware VMEM budget ------------------------------------
    cap = _vmem_capacity_bytes()
    vmem_limit = int(cap * 0.90)        # explicit scoped-VMEM limit we request
    budget = int(vmem_limit * 0.85)     # headroom for compiler-internal temps

    # ---- resident (grid-invariant) footprint ------------------------------
    wb = max(1, int(weight_buffers))
    resident = 0
    for i in range(n):
        pin, pout = pdims[i], pdims[i + 1]
        resident += wb * _round_up(pin, 16) * pout * 2   # bf16 W (16-sublane pad)
        resident += wb * 8 * pout * 4                    # f32 bias (8-sublane pad)

    # Per-batch-row bytes: double-buffered x/out tiles + live activations
    # (previous f32 act + its bf16 cast + new f32 accumulator).
    bytes_per_row = (2 * pdims[0] * 4
                     + 2 * OUT_pad * 4
                     + max(pdims) * 10)

    avail = budget - resident
    if avail < 8 * bytes_per_row:
        # TODO(synk): feature-tiled fallback (second grid axis over output
        # features / emit_pipeline over K) for MLPs whose resident weights
        # exceed the VMEM budget instead of the all-weights-resident design.
        raise ValueError(
            f"Resident MLP weights ({resident} B) do not fit the VMEM budget "
            f"({budget} B); feature-dim tiling fallback not implemented.")

    tm_fit = (avail // bytes_per_row) // 8 * 8

    # ---- batch tile: >=2 grid steps when possible (v7x megacore) ----------
    B8 = _round_up(B, 8)
    tm_cap = tm_max
    if B8 >= 16:
        tm_cap = min(tm_cap, _round_up((B8 + 1) // 2, 8))
    TM = max(8, min(tm_cap, B8, tm_fit))
    B_pad = _round_up(B8, TM)

    # ---- zero-pad inputs / params on the host -----------------------------
    x_p = jnp.zeros((B_pad, pdims[0]), jnp.float32).at[:B, :IN].set(
        x.astype(jnp.float32))

    padded_params = []
    for i, (w, b) in enumerate(params):
        win, wout = w.shape
        w_p = jnp.zeros((pdims[i], pdims[i + 1]), jnp.bfloat16).at[:win, :wout].set(
            w.astype(jnp.bfloat16))
        b_p = jnp.zeros((1, pdims[i + 1]), jnp.float32).at[0, :wout].set(
            b.astype(jnp.float32))
        padded_params.append((w_p, b_p))

    # ---- specs -------------------------------------------------------------
    def _batch_map(i):
        return (i, 0)

    def _const_map(i):
        return (0, 0)

    const_kwargs = {}
    if wb != 2:
        # Grid-invariant blocks: no double-buffering needed.
        const_kwargs = dict(pipeline_mode=pl.Buffered(wb))

    in_specs = [pl.BlockSpec((TM, pdims[0]), _batch_map)]
    flat_inputs = [x_p]
    for w_p, b_p in padded_params:
        in_specs.append(pl.BlockSpec(w_p.shape, _const_map, **const_kwargs))
        in_specs.append(pl.BlockSpec(b_p.shape, _const_map, **const_kwargs))
        flat_inputs += [w_p, b_p]
    out_spec = pl.BlockSpec((TM, OUT_pad), _batch_map)

    flops = 2 * B_pad * sum(pdims[i] * pdims[i + 1] for i in range(n))
    transcendentals = B_pad * sum(pdims[i + 1] for i in range(n) if tanh_flags[i])
    bytes_accessed = (4 * B_pad * (pdims[0] + OUT_pad)
                      + sum(2 * pdims[i] * pdims[i + 1] + 4 * pdims[i + 1]
                            for i in range(n)))

    kernel = _make_fused_mlp_kernel(n, tanh_flags)

    out_p = pl.pallas_call(
        kernel,
        out_shape=jax.ShapeDtypeStruct((B_pad, OUT_pad), jnp.float32),
        grid_spec=pl.GridSpec(grid=(B_pad // TM,),
                              in_specs=in_specs, out_specs=out_spec),
        compiler_params=pltpu.CompilerParams(
            dimension_semantics=("parallel",),
            vmem_limit_bytes=vmem_limit),
        cost_estimate=pl.CostEstimate(
            flops=flops,
            transcendentals=transcendentals,
            bytes_accessed=bytes_accessed),
    )(*flat_inputs)

    # Slice away batch / feature padding.
    return out_p[:B, :OUT]


def init_mlp_params(key, input_size, hidden_units, output_size, is_mmlp):
    """Deterministic parameter init (PyTorch-Linear-style uniform bounds)."""
    dims = [input_size] + list(hidden_units)
    if not is_mmlp:
        dims = dims + [output_size]
    params = []
    for i in range(len(dims) - 1):
        fan_in, fan_out = dims[i], dims[i + 1]
        key, kw, kb = jax.random.split(key, 3)
        bound = 1.0 / jnp.sqrt(jnp.float32(fan_in))
        w = jax.random.uniform(kw, (fan_in, fan_out), jnp.float32,
                               minval=-bound, maxval=bound)
        b = jax.random.uniform(kb, (fan_out,), jnp.float32,
                               minval=-bound, maxval=bound)
        params.append((w, b))
    return params


def mlp_reference(x, params, is_mmlp):
    n = len(params)
    h = x
    for i, (w, b) in enumerate(params):
        h = h @ w + b
        if is_mmlp or i < n - 1:
            h = jnp.tanh(h)
    return h


if __name__ == "__main__":
    # Small, module-consistent configuration:
    #   input_size=16, hidden_layers=2, hidden_units=[32, 32], output_size=8,
    #   activation=Tanh, is_MMLP=False, batch=4
    input_size = 16
    hidden_units = [32, 32]
    output_size = 8
    is_mmlp = False
    batch = 4

    key = jax.random.PRNGKey(0)
    key, kx = jax.random.split(key)
    x = jax.random.normal(kx, (batch, input_size), jnp.float32)

    params = init_mlp_params(key, input_size, hidden_units, output_size, is_mmlp)

    def run(weight_buffers):
        fwd = jax.jit(functools.partial(mlp_forward_fused, is_mmlp=is_mmlp,
                                        weight_buffers=weight_buffers))
        return jax.block_until_ready(fwd(x, params))

    try:
        out = run(1)   # single-buffered grid-invariant weights/biases
    except Exception:
        out = run(2)   # fallback: default double-buffering

    ref = mlp_reference(x, params, is_mmlp)
    assert out.shape == (batch, output_size)
    # bf16 matmul inputs (f32 accumulation) -> loosened tolerance vs f32 ref.
    assert jnp.allclose(out, ref, atol=2e-2, rtol=2e-2), \
        float(jnp.max(jnp.abs(out - ref)))

    print("KERNEL_OK")
</pallas_src>

<mosaic_0001>
module attributes {stable_mosaic.version = 11 : i64} {
  func.func @kernel(%arg0: i32, %arg1: memref<8x16xf32, #tpu.memory_space<vmem>>, %arg2: memref<16x128xbf16, #tpu.memory_space<vmem>>, %arg3: memref<1x128xf32, #tpu.memory_space<vmem>>, %arg4: memref<128x128xbf16, #tpu.memory_space<vmem>>, %arg5: memref<1x128xf32, #tpu.memory_space<vmem>>, %arg6: memref<128x128xbf16, #tpu.memory_space<vmem>>, %arg7: memref<1x128xf32, #tpu.memory_space<vmem>>, %arg8: memref<8x128xf32, #tpu.memory_space<vmem>>) attributes {dimension_semantics = [#tpu.dimension_semantics<parallel>], iteration_bounds = array<i64: 1>, scalar_prefetch = 0 : i64, scratch_operands = 0 : i64, tpu.core_type = #tpu.core_type<tc>, window_params = [{transform_indices = @transform_0, window_bounds = array<i64: 8, 16>}, {pipeline_mode = #tpu.pipeline_mode<synchronous>, transform_indices = @transform_1, window_bounds = array<i64: 16, 128>}, {pipeline_mode = #tpu.pipeline_mode<synchronous>, transform_indices = @transform_2, window_bounds = array<i64: 1, 128>}, {pipeline_mode = #tpu.pipeline_mode<synchronous>, transform_indices = @transform_3, window_bounds = array<i64: 128, 128>}, {pipeline_mode = #tpu.pipeline_mode<synchronous>, transform_indices = @transform_4, window_bounds = array<i64: 1, 128>}, {pipeline_mode = #tpu.pipeline_mode<synchronous>, transform_indices = @transform_5, window_bounds = array<i64: 128, 128>}, {pipeline_mode = #tpu.pipeline_mode<synchronous>, transform_indices = @transform_6, window_bounds = array<i64: 1, 128>}, {transform_indices = @transform_7, window_bounds = array<i64: 8, 128>}]} {
    %c0 = arith.constant 0 : index
    %c0_0 = arith.constant 0 : index
    %0 = vector.load %arg1[%c0, %c0_0] : memref<8x16xf32, #tpu.memory_space<vmem>>, vector<8x16xf32>
    %1 = arith.truncf %0 : vector<8x16xf32> to vector<8x16xbf16>
    %c0_1 = arith.constant 0 : index
    %c0_2 = arith.constant 0 : index
    %2 = vector.load %arg2[%c0_1, %c0_2] : memref<16x128xbf16, #tpu.memory_space<vmem>>, vector<16x128xbf16>
    %cst = arith.constant dense<0.000000e+00> : vector<8x128xf32>
    %3 = tpu.matmul %1, %2, %cst {dimension_numbers = #tpu.dot_dimension_numbers<[1], [0], [0], [1], [0, 0, 1, 1], [], []>} : vector<8x16xbf16>, vector<16x128xbf16>, vector<8x128xf32> -> vector<8x128xf32>
    %c0_3 = arith.constant 0 : index
    %c0_4 = arith.constant 0 : index
    %4 = vector.load %arg3[%c0_3, %c0_4] : memref<1x128xf32, #tpu.memory_space<vmem>>, vector<1x128xf32>
    %5 = vector.broadcast %4 : vector<1x128xf32> to vector<8x128xf32>
    %6 = arith.addf %3, %5 : vector<8x128xf32>
    %7 = math.tanh %6 : vector<8x128xf32>
    %8 = arith.truncf %7 : vector<8x128xf32> to vector<8x128xbf16>
    %c0_5 = arith.constant 0 : index
    %c0_6 = arith.constant 0 : index
    %9 = vector.load %arg4[%c0_5, %c0_6] : memref<128x128xbf16, #tpu.memory_space<vmem>>, vector<128x128xbf16>
    %cst_7 = arith.constant dense<0.000000e+00> : vector<8x128xf32>
    %10 = tpu.matmul %8, %9, %cst_7 {dimension_numbers = #tpu.dot_dimension_numbers<[1], [0], [0], [1], [0, 0, 1, 1], [], []>} : vector<8x128xbf16>, vector<128x128xbf16>, vector<8x128xf32> -> vector<8x128xf32>
    %c0_8 = arith.constant 0 : index
    %c0_9 = arith.constant 0 : index
    %11 = vector.load %arg5[%c0_8, %c0_9] : memref<1x128xf32, #tpu.memory_space<vmem>>, vector<1x128xf32>
    %12 = vector.broadcast %11 : vector<1x128xf32> to vector<8x128xf32>
    %13 = arith.addf %10, %12 : vector<8x128xf32>
    %14 = math.tanh %13 : vector<8x128xf32>
    %15 = arith.truncf %14 : vector<8x128xf32> to vector<8x128xbf16>
    %c0_10 = arith.constant 0 : index
    %c0_11 = arith.constant 0 : index
    %16 = vector.load %arg6[%c0_10, %c0_11] : memref<128x128xbf16, #tpu.memory_space<vmem>>, vector<128x128xbf16>
    %cst_12 = arith.constant dense<0.000000e+00> : vector<8x128xf32>
    %17 = tpu.matmul %15, %16, %cst_12 {dimension_numbers = #tpu.dot_dimension_numbers<[1], [0], [0], [1], [0, 0, 1, 1], [], []>} : vector<8x128xbf16>, vector<128x128xbf16>, vector<8x128xf32> -> vector<8x128xf32>
    %c0_13 = arith.constant 0 : index
    %c0_14 = arith.constant 0 : index
    %18 = vector.load %arg7[%c0_13, %c0_14] : memref<1x128xf32, #tpu.memory_space<vmem>>, vector<1x128xf32>
    %19 = vector.broadcast %18 : vector<1x128xf32> to vector<8x128xf32>
    %20 = arith.addf %17, %19 : vector<8x128xf32>
    %c0_15 = arith.constant 0 : index
    %c0_16 = arith.constant 0 : index
    %21 = vector.load %arg8[%c0_15, %c0_16] : memref<8x128xf32, #tpu.memory_space<vmem>>, vector<8x128xf32>
    tpu.vector_store %arg8[%c0_15, %c0_16], %20 {strides = array<i32>} : memref<8x128xf32, #tpu.memory_space<vmem>>, vector<8x128xf32>,
    return
  }
  func.func @transform_0(%arg0: i32) -> (i32, i32) {
    %c0_i32 = arith.constant 0 : i32
    %c0_i32_0 = arith.constant 0 : i32
    return %arg0, %c0_i32 : i32, i32
  }
  func.func @transform_1(%arg0: i32) -> (i32, i32) {
    %c0_i32 = arith.constant 0 : i32
    %c0_i32_0 = arith.constant 0 : i32
    %c0_i32_1 = arith.constant 0 : i32
    return %c0_i32, %c0_i32_0 : i32, i32
  }
  func.func @transform_2(%arg0: i32) -> (i32, i32) {
    %c0_i32 = arith.constant 0 : i32
    %c0_i32_0 = arith.constant 0 : i32
    %c0_i32_1 = arith.constant 0 : i32
    return %c0_i32, %c0_i32_0 : i32, i32
  }
  func.func @transform_3(%arg0: i32) -> (i32, i32) {
    %c0_i32 = arith.constant 0 : i32
    %c0_i32_0 = arith.constant 0 : i32
    %c0_i32_1 = arith.constant 0 : i32
    return %c0_i32, %c0_i32_0 : i32, i32
  }
  func.func @transform_4(%arg0: i32) -> (i32, i32) {
    %c0_i32 = arith.constant 0 : i32
    %c0_i32_0 = arith.constant 0 : i32
    %c0_i32_1 = arith.constant 0 : i32
    return %c0_i32, %c0_i32_0 : i32, i32
  }
  func.func @transform_5(%arg0: i32) -> (i32, i32) {
    %c0_i32 = arith.constant 0 : i32
    %c0_i32_0 = arith.constant 0 : i32
    %c0_i32_1 = arith.constant 0 : i32
    return %c0_i32, %c0_i32_0 : i32, i32
  }
  func.func @transform_6(%arg0: i32) -> (i32, i32) {
    %c0_i32 = arith.constant 0 : i32
    %c0_i32_0 = arith.constant 0 : i32
    %c0_i32_1 = arith.constant 0 : i32
    return %c0_i32, %c0_i32_0 : i32, i32
  }
  func.func @transform_7(%arg0: i32) -> (i32, i32) {
    %c0_i32 = arith.constant 0 : i32
    %c0_i32_0 = arith.constant 0 : i32
    return %arg0, %c0_i32 : i32, i32
  }
}

module attributes {stable_mosaic.version = 11 : i64} {
  func.func @kernel(%arg0: i32, %arg1: memref<8x16xf32, #tpu.memory_space<vmem>>, %arg2: memref<16x128xbf16, #tpu.memory_space<vmem>>, %arg3: memref<1x128xf32, #tpu.memory_space<vmem>>, %arg4: memref<128x128xbf16, #tpu.memory_space<vmem>>, %arg5: memref<1x128xf32, #tpu.memory_space<vmem>>, %arg6: memref<128x128xbf16, #tpu.memory_space<vmem>>, %arg7: memref<1x128xf32, #tpu.memory_space<vmem>>, %arg8: memref<8x128xf32, #tpu.memory_space<vmem>>) attributes {dimension_semantics = [#tpu.dimension_semantics<parallel>], iteration_bounds = array<i64: 1>, scalar_prefetch = 0 : i64, scratch_operands = 0 : i64, tpu.core_type = #tpu.core_type<tc>, window_params = [{transform_indices = @transform_0, window_bounds = array<i64: 8, 16>}, {pipeline_mode = #tpu.pipeline_mode<synchronous>, transform_indices = @transform_1, window_bounds = array<i64: 16, 128>}, {pipeline_mode = #tpu.pipeline_mode<synchronous>, transform_indices = @transform_2, window_bounds = array<i64: 1, 128>}, {pipeline_mode = #tpu.pipeline_mode<synchronous>, transform_indices = @transform_3, window_bounds = array<i64: 128, 128>}, {pipeline_mode = #tpu.pipeline_mode<synchronous>, transform_indices = @transform_4, window_bounds = array<i64: 1, 128>}, {pipeline_mode = #tpu.pipeline_mode<synchronous>, transform_indices = @transform_5, window_bounds = array<i64: 128, 128>}, {pipeline_mode = #tpu.pipeline_mode<synchronous>, transform_indices = @transform_6, window_bounds = array<i64: 1, 128>}, {transform_indices = @transform_7, window_bounds = array<i64: 8, 128>}]} {
    %c0 = arith.constant 0 : index
    %c0_0 = arith.constant 0 : index
    %0 = vector.load %arg1[%c0, %c0_0] : memref<8x16xf32, #tpu.memory_space<vmem>>, vector<8x16xf32>
    %1 = arith.truncf %0 : vector<8x16xf32> to vector<8x16xbf16>
    %c0_1 = arith.constant 0 : index
    %c0_2 = arith.constant 0 : index
    %2 = vector.load %arg2[%c0_1, %c0_2] : memref<16x128xbf16, #tpu.memory_space<vmem>>, vector<16x128xbf16>
    %cst = arith.constant dense<0.000000e+00> : vector<8x128xf32>
    %3 = tpu.matmul %1, %2, %cst {dimension_numbers = #tpu.dot_dimension_numbers<[1], [0], [0], [1], [0, 0, 1, 1], [], []>} : vector<8x16xbf16>, vector<16x128xbf16>, vector<8x128xf32> -> vector<8x128xf32>
    %c0_3 = arith.constant 0 : index
    %c0_4 = arith.constant 0 : index
    %4 = vector.load %arg3[%c0_3, %c0_4] : memref<1x128xf32, #tpu.memory_space<vmem>>, vector<1x128xf32>
    %5 = vector.broadcast %4 : vector<1x128xf32> to vector<8x128xf32>
    %6 = arith.addf %3, %5 : vector<8x128xf32>
    %7 = math.tanh %6 : vector<8x128xf32>
    %8 = arith.truncf %7 : vector<8x128xf32> to vector<8x128xbf16>
    %c0_5 = arith.constant 0 : index
    %c0_6 = arith.constant 0 : index
    %9 = vector.load %arg4[%c0_5, %c0_6] : memref<128x128xbf16, #tpu.memory_space<vmem>>, vector<128x128xbf16>
    %cst_7 = arith.constant dense<0.000000e+00> : vector<8x128xf32>
    %10 = tpu.matmul %8, %9, %cst_7 {dimension_numbers = #tpu.dot_dimension_numbers<[1], [0], [0], [1], [0, 0, 1, 1], [], []>} : vector<8x128xbf16>, vector<128x128xbf16>, vector<8x128xf32> -> vector<8x128xf32>
    %c0_8 = arith.constant 0 : index
    %c0_9 = arith.constant 0 : index
    %11 = vector.load %arg5[%c0_8, %c0_9] : memref<1x128xf32, #tpu.memory_space<vmem>>, vector<1x128xf32>
    %12 = vector.broadcast %11 : vector<1x128xf32> to vector<8x128xf32>
    %13 = arith.addf %10, %12 : vector<8x128xf32>
    %14 = math.tanh %13 : vector<8x128xf32>
    %15 = arith.truncf %14 : vector<8x128xf32> to vector<8x128xbf16>
    %c0_10 = arith.constant 0 : index
    %c0_11 = arith.constant 0 : index
    %16 = vector.load %arg6[%c0_10, %c0_11] : memref<128x128xbf16, #tpu.memory_space<vmem>>, vector<128x128xbf16>
    %cst_12 = arith.constant dense<0.000000e+00> : vector<8x128xf32>
    %17 = tpu.matmul %15, %16, %cst_12 {dimension_numbers = #tpu.dot_dimension_numbers<[1], [0], [0], [1], [0, 0, 1, 1], [], []>} : vector<8x128xbf16>, vector<128x128xbf16>, vector<8x128xf32> -> vector<8x128xf32>
    %c0_13 = arith.constant 0 : index
    %c0_14 = arith.constant 0 : index
    %18 = vector.load %arg7[%c0_13, %c0_14] : memref<1x128xf32, #tpu.memory_space<vmem>>, vector<1x128xf32>
    %19 = vector.broadcast %18 : vector<1x128xf32> to vector<8x128xf32>
    %20 = arith.addf %17, %19 : vector<8x128xf32>
    %c0_15 = arith.constant 0 : index
    %c0_16 = arith.constant 0 : index
    %21 = vector.load %arg8[%c0_15, %c0_16] : memref<8x128xf32, #tpu.memory_space<vmem>>, vector<8x128xf32>
    tpu.vector_store %arg8[%c0_15, %c0_16], %20 {strides = array<i32>} : memref<8x128xf32, #tpu.memory_space<vmem>>, vector<8x128xf32>,
    return
  }
  func.func @transform_0(%arg0: i32) -> (i32, i32) {
    %c0_i32 = arith.constant 0 : i32
    %c0_i32_0 = arith.constant 0 : i32
    return %arg0, %c0_i32 : i32, i32
  }
  func.func @transform_1(%arg0: i32) -> (i32, i32) {
    %c0_i32 = arith.constant 0 : i32
    %c0_i32_0 = arith.constant 0 : i32
    %c0_i32_1 = arith.constant 0 : i32
    return %c0_i32, %c0_i32_0 : i32, i32
  }
  func.func @transform_2(%arg0: i32) -> (i32, i32) {
    %c0_i32 = arith.constant 0 : i32
    %c0_i32_0 = arith.constant 0 : i32
    %c0_i32_1 = arith.constant 0 : i32
    return %c0_i32, %c0_i32_0 : i32, i32
  }
  func.func @transform_3(%arg0: i32) -> (i32, i32) {
    %c0_i32 = arith.constant 0 : i32
    %c0_i32_0 = arith.constant 0 : i32
    %c0_i32_1 = arith.constant 0 : i32
    return %c0_i32, %c0_i32_0 : i32, i32
  }
  func.func @transform_4(%arg0: i32) -> (i32, i32) {
    %c0_i32 = arith.constant 0 : i32
    %c0_i32_0 = arith.constant 0 : i32
    %c0_i32_1 = arith.constant 0 : i32
    return %c0_i32, %c0_i32_0 : i32, i32
  }
  func.func @transform_5(%arg0: i32) -> (i32, i32) {
    %c0_i32 = arith.constant 0 : i32
    %c0_i32_0 = arith.constant 0 : i32
    %c0_i32_1 = arith.constant 0 : i32
    return %c0_i32, %c0_i32_0 : i32, i32
  }
  func.func @transform_6(%arg0: i32) -> (i32, i32) {
    %c0_i32 = arith.constant 0 : i32
    %c0_i32_0 = arith.constant 0 : i32
    %c0_i32_1 = arith.constant 0 : i32
    return %c0_i32, %c0_i32_0 : i32, i32
  }
  func.func @transform_7(%arg0: i32) -> (i32, i32) {
    %c0_i32 = arith.constant 0 : i32
    %c0_i32_0 = arith.constant 0 : i32
    return %arg0, %c0_i32 : i32, i32
  }
}

</mosaic_0001>

<bundles_post_ra>
// kernel: mlp_forward_fused.1
= control target key start
LH: loop header
LB: loop body
LE: loop exit
PB: predicated region body
PF: predicated region fallthrough
CT: control target
= control target key end

     0   :  { %v429_v0 = vmov 0.0   ;;  %vm430_vm0 = vmmov 0   ;;  %vm44_vm1 = vcmask 130048   ;;  %s557_s1 = inlined_call_operand.vmem [shape: bf16[16,128], index: 1, kind: input, shape index: {}]   ;;  %s558_s0 = inlined_call_operand.vmem [shape: f32[8,16], index: 0, kind: input, shape index: {}]   ;;  %s559_s3 = inlined_call_operand.vmem [shape: bf16[128,128], index: 3, kind: input, shape index: {}]   ;;  %s560_s5 = inlined_call_operand.vmem [shape: bf16[128,128], index: 5, kind: input, shape index: {}]   ;;  %s561_s2 = inlined_call_operand.vmem [shape: f32[1,128], index: 2, kind: input, shape index: {}]   ;;  %s562_s4 = inlined_call_operand.vmem [shape: f32[1,128], index: 4, kind: input, shape index: {}]   ;;  %s563_s6 = inlined_call_operand.vmem [shape: f32[1,128], index: 6, kind: input, shape index: {}]   ;;  %s564_s7 = inlined_call_operand.vmem [shape: f32[8,128], index: 7, kind: output, shape index: {}]  }
   0x1   :  { %360 = vmatprep.subr.bf16.mxu0 %v429_v0  ;;  %v408_v1 = vld [vmem:[%s557_s1] sm:$0xff]   ;;  %362 = vmatprep.mubr.msk.bf16.mxu0 %vm430_vm0, %v429_v0  ;;  %v410_v5 = vld [vmem:[%s559_s3 + $0x8] sm:$0xff]   ;;  %v411_v6 = vld [vmem:[%s559_s3 + $0x10] sm:$0xff]  }
   0x2   :  { %v27_v2 = vld [vmem:[%s558_s0] sm:$0xff]  ;;  %366 = vmatprep.subr.bf16.mxu1 %v429_v0  ;;  %382 = vmatprep.mubr.msk.bf16.mxu1 %vm430_vm0, %v429_v0  ;;  %v412_v7 = vld [vmem:[%s559_s3 + $0x18] sm:$0xff]   ;;  %v414_v9 = vld [vmem:[%s559_s3 + $0x28] sm:$0xff]  }
   0x3   :  { %361 = vmatpush3.bf16.msra.mxu0 %v408_v1  ;;  %v28_v3 = vpack.c.bf16 %v27_v2, %v27_v2  ;;  %v409_v4 = vld [vmem:[%s559_s3] sm:$0xff]   ;;  %v415_v10 = vld [vmem:[%s559_s3 + $0x30] sm:$0xff]   ;;  %v416_v11 = vld [vmem:[%s559_s3 + $0x38] sm:$0xff]  }
   0x4   :  { %386 = vmatprep.subr.bf16.mxu0 %v429_v0  ;;  %367 = vmatpush3.bf16.msra.mxu1 %v409_v4  ;;  %v413_v8 = vld [vmem:[%s559_s3 + $0x20] sm:$0xff]   ;;  %v418_v13 = vld [vmem:[%s560_s5 + $0x8] sm:$0xff]   ;;  %v419_v14 = vld [vmem:[%s560_s5 + $0x10] sm:$0xff]  }
   0x5   :  { %368 = vmatprep.subr.bf16.mxu1 %v429_v0  ;;  %v417_v12 = vld [vmem:[%s560_s5] sm:$0xff]   ;;  %v420_v15 = vld [vmem:[%s560_s5 + $0x18] sm:$0xff]   ;;  %v422_v25 = vld [vmem:[%s560_s5 + $0x28] sm:$0xff]  }
   0x6   :  { %363 = vmatmul.mubr.msk.bf16.vlgmr.msra.gmra.mrb[0].mxu0 %vm44_vm1, %v28_v3  ;;  %v319_v16 = vld [vmem:[%s561_s2] ss:$0 sm:$0xff]  ;;  %v423_v26 = vld [vmem:[%s560_s5 + $0x30] sm:$0xff]   ;;  %v424_v27 = vld [vmem:[%s560_s5 + $0x38] sm:$0xff]  }
   0x7   :  { %402 = vmatprep.mubr.msk.bf16.mxu0 %vm430_vm0, %v429_v0  ;;  %387 = vmatpush3.bf16.msra.mxu0 %v417_v12  ;;  %v421_v24 = vld [vmem:[%s560_s5 + $0x20] sm:$0xff]  }
   0x8   :  { %369 = vmatpush3.bf16.msra.mxu1 %v410_v5  ;;  %388 = vmatprep.subr.bf16.mxu0 %v429_v0  ;;  %v322_v28 = vld [vmem:[%s562_s4] ss:$0 sm:$0xff] }
   0x9   :  { %370 = vmatprep.subr.bf16.mxu1 %v429_v0  ;;  %v331_v36 = vld [vmem:[%s563_s6] ss:$0 sm:$0xff] }
   0xb   :  { %389 = vmatpush3.bf16.msra.mxu0 %v418_v13 }
   0xc   :  { %371 = vmatpush3.bf16.msra.mxu1 %v411_v6  ;;  %390 = vmatprep.subr.bf16.mxu0 %v429_v0 }
   0xd   :  { %372 = vmatprep.subr.bf16.mxu1 %v429_v0 }
   0xf   :  { %391 = vmatpush3.bf16.msra.mxu0 %v419_v14 }
  0x10   :  { %373 = vmatpush3.bf16.msra.mxu1 %v412_v7  ;;  %392 = vmatprep.subr.bf16.mxu0 %v429_v0 }
  0x11   :  { %374 = vmatprep.subr.bf16.mxu1 %v429_v0 }
  0x13   :  { %393 = vmatpush3.bf16.msra.mxu0 %v420_v15 }
  0x14   :  { %375 = vmatpush3.bf16.msra.mxu1 %v413_v8  ;;  %394 = vmatprep.subr.bf16.mxu0 %v429_v0 }
  0x15   :  { %376 = vmatprep.subr.bf16.mxu1 %v429_v0 }
  0x17   :  { %395 = vmatpush3.bf16.msra.mxu0 %v421_v24 }
  0x18   :  { %377 = vmatpush3.bf16.msra.mxu1 %v414_v9  ;;  %396 = vmatprep.subr.bf16.mxu0 %v429_v0 }
  0x19   :  { %378 = vmatprep.subr.bf16.mxu1 %v429_v0 }
  0x1b   :  { %397 = vmatpush3.bf16.msra.mxu0 %v422_v25 }
  0x1c   :  { %379 = vmatpush3.bf16.msra.mxu1 %v415_v10  ;;  %398 = vmatprep.subr.bf16.mxu0 %v429_v0 }
  0x1d   :  { %380 = vmatprep.subr.bf16.mxu1 %v429_v0 }
  0x1f   :  { %399 = vmatpush3.bf16.msra.mxu0 %v423_v26 }
  0x20   :  { %381 = vmatpush3.bf16.msra.mxu1 %v416_v11  ;;  %400 = vmatprep.subr.bf16.mxu0 %v429_v0 }
  0x23   :  { %401 = vmatpush3.bf16.msra.mxu0 %v424_v27 }
  0xd9   :  { %v82_v17 = vpop.f32.mrb[0].mxu0 }
  0xda   :  { %v83_v18 = vadd.f32 %v319_v16, %v82_v17  ;;  %v364_v19 = vpop.f32.mrb[1].mxu0 }
  0xdb   :  { %v85_v20 = vpop.f32.mrb[2].mxu0 }
  0xdc   :  { %425 = vtanh.f32 %v83_v18  ;;  %v365_v21 = vpop.f32.mrb[3].mxu0 }
  0xe6   :  { %v426_v22 = vpop.eup %425 }
  0xe7   :  { %v89_v23 = vpack.c.bf16 %v426_v22, %v426_v22 }
  0xe9   :  { %383 = vmatmul.mubr.bf16.vlgmr.msra.gmra.mrb[0].mxu1 %v89_v23 }
 0x1bc   :  { %v195_v29 = vpop.f32.mrb[0].mxu1 }
 0x1bd   :  { %v196_v30 = vadd.f32 %v322_v28, %v195_v29  ;;  %v384_v31 = vpop.f32.mrb[1].mxu1 }
 0x1be   :  { %v198_v32 = vpop.f32.mrb[2].mxu1 }
 0x1bf   :  { %427 = vtanh.f32 %v196_v30  ;;  %v385_v33 = vpop.f32.mrb[3].mxu1 }
 0x1c9   :  { %v428_v34 = vpop.eup %427 }
 0x1ca   :  { %v202_v35 = vpack.c.bf16 %v428_v34, %v428_v34 }
 0x1cc   :  { %403 = vmatmul.mubr.bf16.vlgmr.msra.gmra.mrb[4].mxu0 %v202_v35 }
 0x29f   :  { %v308_v37 = vpop.f32.mrb[4].mxu0 }
 0x2a0   :  { %v309_v38 = vadd.f32 %v331_v36, %v308_v37  ;;  %v404_v39 = vpop.f32.mrb[5].mxu0 }
 0x2a1   :  { %v311_v40 = vpop.f32.mrb[6].mxu0 }
 0x2a2   :  { %314 = vst [vmem:[%s564_s7] sm:$0xff] %v309_v38  ;;  %v405_v41 = vpop.f32.mrb[7].mxu0 }

// kernel: mlp_forward_fused.1
= control target key start
LH: loop header
LB: loop body
LE: loop exit
PB: predicated region body
PF: predicated region fallthrough
CT: control target
= control target key end

     0   :  { %v429_v0 = vmov 0.0   ;;  %vm430_vm0 = vmmov 0   ;;  %vm44_vm1 = vcmask 130048   ;;  %s557_s1 = inlined_call_operand.vmem [shape: bf16[16,128], index: 1, kind: input, shape index: {}]   ;;  %s558_s0 = inlined_call_operand.vmem [shape: f32[8,16], index: 0, kind: input, shape index: {}]   ;;  %s559_s3 = inlined_call_operand.vmem [shape: bf16[128,128], index: 3, kind: input, shape index: {}]   ;;  %s560_s5 = inlined_call_operand.vmem [shape: bf16[128,128], index: 5, kind: input, shape index: {}]   ;;  %s561_s2 = inlined_call_operand.vmem [shape: f32[1,128], index: 2, kind: input, shape index: {}]   ;;  %s562_s4 = inlined_call_operand.vmem [shape: f32[1,128], index: 4, kind: input, shape index: {}]   ;;  %s563_s6 = inlined_call_operand.vmem [shape: f32[1,128], index: 6, kind: input, shape index: {}]   ;;  %s564_s7 = inlined_call_operand.vmem [shape: f32[8,128], index: 7, kind: output, shape index: {}]  }
   0x1   :  { %360 = vmatprep.subr.bf16.mxu0 %v429_v0  ;;  %v408_v1 = vld [vmem:[%s557_s1] sm:$0xff]   ;;  %362 = vmatprep.mubr.msk.bf16.mxu0 %vm430_vm0, %v429_v0  ;;  %v410_v5 = vld [vmem:[%s559_s3 + $0x8] sm:$0xff]   ;;  %v411_v6 = vld [vmem:[%s559_s3 + $0x10] sm:$0xff]  }
   0x2   :  { %v27_v2 = vld [vmem:[%s558_s0] sm:$0xff]  ;;  %366 = vmatprep.subr.bf16.mxu1 %v429_v0  ;;  %382 = vmatprep.mubr.msk.bf16.mxu1 %vm430_vm0, %v429_v0  ;;  %v412_v7 = vld [vmem:[%s559_s3 + $0x18] sm:$0xff]   ;;  %v414_v9 = vld [vmem:[%s559_s3 + $0x28] sm:$0xff]  }
   0x3   :  { %361 = vmatpush3.bf16.msra.mxu0 %v408_v1  ;;  %v28_v3 = vpack.c.bf16 %v27_v2, %v27_v2  ;;  %v409_v4 = vld [vmem:[%s559_s3] sm:$0xff]   ;;  %v415_v10 = vld [vmem:[%s559_s3 + $0x30] sm:$0xff]   ;;  %v416_v11 = vld [vmem:[%s559_s3 + $0x38] sm:$0xff]  }
   0x4   :  { %386 = vmatprep.subr.bf16.mxu0 %v429_v0  ;;  %367 = vmatpush3.bf16.msra.mxu1 %v409_v4  ;;  %v413_v8 = vld [vmem:[%s559_s3 + $0x20] sm:$0xff]   ;;  %v418_v13 = vld [vmem:[%s560_s5 + $0x8] sm:$0xff]   ;;  %v419_v14 = vld [vmem:[%s560_s5 + $0x10] sm:$0xff]  }
   0x5   :  { %368 = vmatprep.subr.bf16.mxu1 %v429_v0  ;;  %v417_v12 = vld [vmem:[%s560_s5] sm:$0xff]   ;;  %v420_v15 = vld [vmem:[%s560_s5 + $0x18] sm:$0xff]   ;;  %v422_v25 = vld [vmem:[%s560_s5 + $0x28] sm:$0xff]  }
   0x6   :  { %363 = vmatmul.mubr.msk.bf16.vlgmr.msra.gmra.mrb[0].mxu0 %vm44_vm1, %v28_v3  ;;  %v319_v16 = vld [vmem:[%s561_s2] ss:$0 sm:$0xff]  ;;  %v423_v26 = vld [vmem:[%s560_s5 + $0x30] sm:$0xff]   ;;  %v424_v27 = vld [vmem:[%s560_s5 + $0x38] sm:$0xff]  }
   0x7   :  { %402 = vmatprep.mubr.msk.bf16.mxu0 %vm430_vm0, %v429_v0  ;;  %387 = vmatpush3.bf16.msra.mxu0 %v417_v12  ;;  %v421_v24 = vld [vmem:[%s560_s5 + $0x20] sm:$0xff]  }
   0x8   :  { %369 = vmatpush3.bf16.msra.mxu1 %v410_v5  ;;  %388 = vmatprep.subr.bf16.mxu0 %v429_v0  ;;  %v322_v28 = vld [vmem:[%s562_s4] ss:$0 sm:$0xff] }
   0x9   :  { %370 = vmatprep.subr.bf16.mxu1 %v429_v0  ;;  %v331_v36 = vld [vmem:[%s563_s6] ss:$0 sm:$0xff] }
   0xb   :  { %389 = vmatpush3.bf16.msra.mxu0 %v418_v13 }
   0xc   :  { %371 = vmatpush3.bf16.msra.mxu1 %v411_v6  ;;  %390 = vmatprep.subr.bf16.mxu0 %v429_v0 }
   0xd   :  { %372 = vmatprep.subr.bf16.mxu1 %v429_v0 }
   0xf   :  { %391 = vmatpush3.bf16.msra.mxu0 %v419_v14 }
  0x10   :  { %373 = vmatpush3.bf16.msra.mxu1 %v412_v7  ;;  %392 = vmatprep.subr.bf16.mxu0 %v429_v0 }
  0x11   :  { %374 = vmatprep.subr.bf16.mxu1 %v429_v0 }
  0x13   :  { %393 = vmatpush3.bf16.msra.mxu0 %v420_v15 }
  0x14   :  { %375 = vmatpush3.bf16.msra.mxu1 %v413_v8  ;;  %394 = vmatprep.subr.bf16.mxu0 %v429_v0 }
  0x15   :  { %376 = vmatprep.subr.bf16.mxu1 %v429_v0 }
  0x17   :  { %395 = vmatpush3.bf16.msra.mxu0 %v421_v24 }
  0x18   :  { %377 = vmatpush3.bf16.msra.mxu1 %v414_v9  ;;  %396 = vmatprep.subr.bf16.mxu0 %v429_v0 }
  0x19   :  { %378 = vmatprep.subr.bf16.mxu1 %v429_v0 }
  0x1b   :  { %397 = vmatpush3.bf16.msra.mxu0 %v422_v25 }
  0x1c   :  { %379 = vmatpush3.bf16.msra.mxu1 %v415_v10  ;;  %398 = vmatprep.subr.bf16.mxu0 %v429_v0 }
  0x1d   :  { %380 = vmatprep.subr.bf16.mxu1 %v429_v0 }
  0x1f   :  { %399 = vmatpush3.bf16.msra.mxu0 %v423_v26 }
  0x20   :  { %381 = vmatpush3.bf16.msra.mxu1 %v416_v11  ;;  %400 = vmatprep.subr.bf16.mxu0 %v429_v0 }
  0x23   :  { %401 = vmatpush3.bf16.msra.mxu0 %v424_v27 }
  0xd9   :  { %v82_v17 = vpop.f32.mrb[0].mxu0 }
  0xda   :  { %v83_v18 = vadd.f32 %v319_v16, %v82_v17  ;;  %v364_v19 = vpop.f32.mrb[1].mxu0 }
  0xdb   :  { %v85_v20 = vpop.f32.mrb[2].mxu0 }
  0xdc   :  { %425 = vtanh.f32 %v83_v18  ;;  %v365_v21 = vpop.f32.mrb[3].mxu0 }
  0xe6   :  { %v426_v22 = vpop.eup %425 }
  0xe7   :  { %v89_v23 = vpack.c.bf16 %v426_v22, %v426_v22 }
  0xe9   :  { %383 = vmatmul.mubr.bf16.vlgmr.msra.gmra.mrb[0].mxu1 %v89_v23 }
 0x1bc   :  { %v195_v29 = vpop.f32.mrb[0].mxu1 }
 0x1bd   :  { %v196_v30 = vadd.f32 %v322_v28, %v195_v29  ;;  %v384_v31 = vpop.f32.mrb[1].mxu1 }
 0x1be   :  { %v198_v32 = vpop.f32.mrb[2].mxu1 }
 0x1bf   :  { %427 = vtanh.f32 %v196_v30  ;;  %v385_v33 = vpop.f32.mrb[3].mxu1 }
 0x1c9   :  { %v428_v34 = vpop.eup %427 }
 0x1ca   :  { %v202_v35 = vpack.c.bf16 %v428_v34, %v428_v34 }
 0x1cc   :  { %403 = vmatmul.mubr.bf16.vlgmr.msra.gmra.mrb[4].mxu0 %v202_v35 }
 0x29f   :  { %v308_v37 = vpop.f32.mrb[4].mxu0 }
 0x2a0   :  { %v309_v38 = vadd.f32 %v331_v36, %v308_v37  ;;  %v404_v39 = vpop.f32.mrb[5].mxu0 }
 0x2a1   :  { %v311_v40 = vpop.f32.mrb[6].mxu0 }
 0x2a2   :  { %314 = vst [vmem:[%s564_s7] sm:$0xff] %v309_v38  ;;  %v405_v41 = vpop.f32.mrb[7].mxu0 }

</bundles_post_ra>
